<compile_context>
chip_gen: v5e
topology: v5e:2x2
jax: 0.10.0
libtpu: 0.0.40
codegen_flags: <defaults>
</compile_context>

<pallas_src>
import math
from functools import partial

import jax
import jax.numpy as jnp
from jax.experimental import pallas as pl
from jax.experimental.pallas import tpu as pltpu

LN_EPS = 1e-5          # PyTorch nn.LayerNorm default eps
_SQRT2 = math.sqrt(2.0)
_NEG_BIG = -1e30       # additive-mask equivalent of -inf (exp underflows to 0)
                       # NOTE: safe only because the causal diagonal is never
                       # masked (no fully-masked rows).


def _gelu_exact(y):
    # F.gelu default = exact (erf-based) GELU; kept in f32.
    return 0.5 * y * (1.0 + jax.lax.erf(y / _SQRT2))


# ----------------------------------------------------------------------------
# Fused transformer stack: all NL layers for one batch block.
#   grid = (B // Bt, NL); the residual stream lives in the resident output
#   block across the layer ("arbitrary") axis; per-layer weight blocks are
#   indexed by the layer grid coordinate and double-buffer-prefetched.
# ----------------------------------------------------------------------------
def _layers_kernel(nh, dh, causal,
                   x_ref, g_ref, b_ref, wx_ref, bx_ref, wo_ref, bo_ref, o_ref):
    li = pl.program_id(1)
    Bt, L, D = x_ref.shape
    # NOTE: PyTorch source scales by sqrt(model dim D), not sqrt(head dim).
    scale = 1.0 / math.sqrt(D)

    # Residual stream: initialize from the embeddings at layer 0; the output
    # block's index_map is constant over li, so it stays resident in VMEM
    # across all layers and is written back to HBM only once per batch block.
    @pl.when(li == 0)
    def _():
        o_ref[...] = x_ref[...]

    x = o_ref[...]                                            # [Bt, L, D] f32

    # --- LayerNorm (f32, biased variance = PyTorch semantics) ---
    mu = jnp.mean(x, axis=-1, keepdims=True)
    xc = x - mu
    var = jnp.mean(xc * xc, axis=-1, keepdims=True)
    ln = xc * jax.lax.rsqrt(var + LN_EPS) * g_ref[0] + b_ref[0]

    # --- QKV projection: ONE lane-dense [Bt*L, D] @ [D, 3D] matmul
    #     (bf16 MXU operands, f32 accumulation) ---
    ln2 = ln.reshape(Bt * L, D).astype(jnp.bfloat16)
    qkv = jnp.dot(ln2, wx_ref[0], preferred_element_type=jnp.float32) + bx_ref[0]
    qkv = qkv.reshape(Bt, L, 3 * D)       # columns ordered (q|k|v) x (head, dh)

    if causal:
        row = jax.lax.broadcasted_iota(jnp.int32, (1, L, L), 1)
        col = jax.lax.broadcasted_iota(jnp.int32, (1, L, L), 2)
        keep = col <= row                                     # [1, L, L]

    # TODO(synk): for long sequences, add flash-style [L, L] score tiling
    # (tile sizes 256-multiples on v6e/v7x, 128 on v5e).

    # --- per-head attention; head outputs never touch VMEM scratch: the
    #     output projection is fused per head against wo[h] (lane-dense N=D)
    #     and accumulated in f32 vregs. ---
    attn = None
    for h in range(nh):                                       # static unroll
        q_h = qkv[:, :, h * dh:(h + 1) * dh].astype(jnp.bfloat16)
        k_h = qkv[:, :, D + h * dh:D + (h + 1) * dh].astype(jnp.bfloat16)
        v_h = qkv[:, :, 2 * D + h * dh:2 * D + (h + 1) * dh].astype(jnp.bfloat16)

        s = jnp.einsum('bik,bjk->bij', q_h, k_h,
                       preferred_element_type=jnp.float32) * scale   # [Bt,L,L]
        if causal:
            s = jnp.where(keep, s, _NEG_BIG)

        # softmax in f32 (reciprocal on the EUP; approx is fine here — hidden
        # under the MXU and not an externally visible probability).
        s = s - jnp.max(s, axis=-1, keepdims=True)
        p = jnp.exp(s)
        p = p * pl.reciprocal(jnp.sum(p, axis=-1, keepdims=True), approx=True)

        out_h = jnp.einsum('bij,bjk->bik', p.astype(jnp.bfloat16), v_h,
                           preferred_element_type=jnp.float32)        # [Bt,L,dh]
        contrib = jnp.dot(out_h.reshape(Bt * L, dh).astype(jnp.bfloat16),
                          wo_ref[0, h], preferred_element_type=jnp.float32)
        attn = contrib if attn is None else attn + contrib

    attn = (attn + bo_ref[0]).reshape(Bt, L, D)
    o_ref[...] = _gelu_exact(x + attn)


def pack_layer_params(layers, nh):
    """Host-side layout plumbing, done ONCE: stack per-layer params, cast
    matmul weights to bf16 and repack wo per head for the fused projection."""
    D = layers[0]["wx"].shape[0]
    dh = D // nh
    return dict(
        ln_g=jnp.stack([p["ln_g"] for p in layers]),                      # [NL,1,D]
        ln_b=jnp.stack([p["ln_b"] for p in layers]),                      # [NL,1,D]
        wx=jnp.stack([p["wx"] for p in layers]).astype(jnp.bfloat16),     # [NL,D,3D]
        bx=jnp.stack([p["bx"] for p in layers]),                          # [NL,1,3D]
        wo=jnp.stack([p["wo"].reshape(nh, dh, D) for p in layers]
                     ).astype(jnp.bfloat16),                              # [NL,nh,dh,D]
        bo=jnp.stack([p["bo"] for p in layers]),                          # [NL,1,D]
    )


def prepare_params(params, nh):
    """One-time packing/casting (hoisted out of lm_forward per perf review)."""
    return dict(
        emb=params["emb"],
        layers=pack_layer_params(params["layers"], nh),
        actor_w=params["actor_w"].astype(jnp.bfloat16),    # [D, V] bf16
        actor_b=params["actor_b"],                         # [1, V]
        critic_w_row=params["critic_w"].T,                 # [1, D]
        critic_b=params["critic_b"],                       # [1, 1]
    )


def layers_forward(x, lp, nh, dh, causal, batch_block=None):
    B, L, D = x.shape
    NL = lp["wx"].shape[0]
    if batch_block is None:
        # Amortize each layer's weight DMA over Bt batch rows, while keeping
        # >=2 blocks on the parallel axis when possible (v7x has 2 TensorCores).
        batch_block = max(1, B // 2)
    while B % batch_block:
        batch_block -= 1
    Bt = batch_block
    kernel = partial(_layers_kernel, nh, dh, causal)
    # TODO(synk): at production D the double-buffered wx+wo stream (~16*D^2 B)
    # exceeds v7x's 64 MiB VMEM — add a D-reduction grid axis for wx/wo and
    # size vmem_limit_bytes per generation.
    return pl.pallas_call(
        kernel,
        out_shape=jax.ShapeDtypeStruct((B, L, D), jnp.float32),
        grid=(B // Bt, NL),
        in_specs=[
            pl.BlockSpec((Bt, L, D), lambda b, li: (b, 0, 0)),           # embeddings
            pl.BlockSpec((1, 1, D), lambda b, li: (li, 0, 0)),           # ln gamma
            pl.BlockSpec((1, 1, D), lambda b, li: (li, 0, 0)),           # ln beta
            pl.BlockSpec((1, D, 3 * D), lambda b, li: (li, 0, 0)),       # wx (bf16)
            pl.BlockSpec((1, 1, 3 * D), lambda b, li: (li, 0, 0)),       # bx
            pl.BlockSpec((1, nh, dh, D), lambda b, li: (li, 0, 0, 0)),   # wo (bf16)
            pl.BlockSpec((1, 1, D), lambda b, li: (li, 0, 0)),           # bo
        ],
        out_specs=pl.BlockSpec((Bt, L, D), lambda b, li: (b, 0, 0)),
        compiler_params=pltpu.CompilerParams(
            dimension_semantics=("parallel", "arbitrary"),
            vmem_limit_bytes=32 * 1024 * 1024),
    )(x, lp["ln_g"], lp["ln_b"], lp["wx"], lp["bx"], lp["wo"], lp["bo"])


# ----------------------------------------------------------------------------
# Actor head: softmax(Linear(d -> v) applied to x[:, -1])
#   * logits matmul tiled over V in lane-dense blocks (weight double-buffered)
#   * exact softmax divide (these are output probabilities)
# ----------------------------------------------------------------------------
def _logits_kernel(x_ref, w_ref, b_ref, o_ref):
    o_ref[...] = (jnp.dot(x_ref[...].astype(jnp.bfloat16), w_ref[...],
                          preferred_element_type=jnp.float32) + b_ref[...])


def _softmax_kernel(x_ref, o_ref):
    x = x_ref[...]
    e = jnp.exp(x - jnp.max(x, axis=-1, keepdims=True))
    # Exact divide (NOT approx reciprocal): probabilities must sum to 1.
    o_ref[...] = e / jnp.sum(e, axis=-1, keepdims=True)


def actor_head(x_last, w_bf16, b_):
    B, D = x_last.shape
    V = w_bf16.shape[1]
    tv = 512 if V % 512 == 0 else (128 if V % 128 == 0 else V)
    logits = pl.pallas_call(
        _logits_kernel,
        out_shape=jax.ShapeDtypeStruct((B, V), jnp.float32),
        grid=(V // tv,),
        in_specs=[
            pl.BlockSpec((B, D), lambda j: (0, 0)),
            pl.BlockSpec((D, tv), lambda j: (0, j)),
            pl.BlockSpec((1, tv), lambda j: (0, j)),
        ],
        out_specs=pl.BlockSpec((B, tv), lambda j: (0, j)),
        compiler_params=pltpu.CompilerParams(
            dimension_semantics=("parallel",)),
    )(x_last, w_bf16, b_)
    # TODO(synk): for very large vocabularies, tile this softmax pass too
    # (two-pass max/sum over V blocks) instead of one [B, V] block.
    return pl.pallas_call(
        _softmax_kernel,
        out_shape=jax.ShapeDtypeStruct((B, V), jnp.float32),
        grid=(1,),
        in_specs=[pl.BlockSpec((B, V), lambda i: (0, 0))],
        out_specs=pl.BlockSpec((B, V), lambda i: (0, 0)),
    )(logits)


# ----------------------------------------------------------------------------
# Critic head: sum over sequence of Linear(d -> 1)  ->  [B]
#   sum_l (x_l . w + b) == (sum_l x_l) . w + L*b
#   Sequence axis is tiled (accumulating grid axis); the final d->1 projection
#   is a VPU multiply + lane-reduce rather than an N=1 MXU matmul.
# ----------------------------------------------------------------------------
def _critic_kernel(seq_len, x_ref, w_ref, b_ref, o_ref, acc_ref):
    li = pl.program_id(0)

    @pl.when(li == 0)
    def _():
        acc_ref[...] = jnp.zeros_like(acc_ref)

    acc_ref[...] += jnp.sum(x_ref[...], axis=1)              # [B, D]

    @pl.when(li == pl.num_programs(0) - 1)
    def _():
        o_ref[...] = (jnp.sum(acc_ref[...] * w_ref[...], axis=-1, keepdims=True)
                      + seq_len * b_ref[...])


def critic_head(x, w_row, b_):
    B, L, D = x.shape
    tl = L
    for cand in (512, 256, 128, 64, 32, 16, 8):
        if L >= cand and L % cand == 0:
            tl = cand
            break
    return pl.pallas_call(
        partial(_critic_kernel, float(L)),
        out_shape=jax.ShapeDtypeStruct((B, 1), jnp.float32),
        grid=(L // tl,),
        in_specs=[
            pl.BlockSpec((B, tl, D), lambda i: (0, i, 0)),
            pl.BlockSpec((1, D), lambda i: (0, 0)),
            pl.BlockSpec((1, 1), lambda i: (0, 0)),
        ],
        out_specs=pl.BlockSpec((B, 1), lambda i: (0, 0)),
        scratch_shapes=[pltpu.VMEM((B, D), jnp.float32)],
        compiler_params=pltpu.CompilerParams(
            dimension_semantics=("arbitrary",)),
    )(x, w_row, b_)


# ----------------------------------------------------------------------------
# Full LM.forward (takes pre-packed params)
# ----------------------------------------------------------------------------
def lm_forward(tokens, prepared, nh, actor=True):
    D = prepared["emb"].shape[1]
    dh = D // nh
    # Embedding gather kept in JAX glue (data-dependent gather).
    x = jnp.take(prepared["emb"], tokens, axis=0)             # [B, L, D]
    x = layers_forward(x, prepared["layers"], nh, dh, causal=actor)
    if not actor:
        return critic_head(x, prepared["critic_w_row"], prepared["critic_b"])[:, 0]
    return actor_head(x[:, -1, :], prepared["actor_w"], prepared["actor_b"])


# ----------------------------------------------------------------------------
# Deterministic parameter init (synthetic; shapes follow the PyTorch module)
# ----------------------------------------------------------------------------
def init_params(key, d, nh, nl, L, V):
    ks = iter(jax.random.split(key, 6 * nl + 8))

    def dense(shape, scale=0.05):
        return (scale * jax.random.normal(next(ks), shape)).astype(jnp.float32)

    layers = []
    for _ in range(nl):
        layers.append(dict(
            ln_g=jnp.ones((1, d), jnp.float32),
            ln_b=jnp.zeros((1, d), jnp.float32),
            wx=dense((d, 3 * d)),
            bx=dense((1, 3 * d)),
            wo=dense((d, d)),
            bo=dense((1, d)),
        ))
    tri = jnp.tril(jnp.ones((L, L), jnp.float32))
    mask = jnp.where(tri == 1.0, 0.0, -jnp.inf).astype(jnp.float32)
    return dict(
        emb=dense((V, d), scale=0.1),
        actor_w=dense((d, V)),
        actor_b=dense((1, V)),
        critic_w=dense((d, 1)),
        critic_b=dense((1, 1)),
        layers=layers,
        mask=mask,          # used only by the pure-JAX reference
    )


# ----------------------------------------------------------------------------
# Pure-JAX reference (mirrors the PyTorch forward exactly, f32), for validation
# ----------------------------------------------------------------------------
def ref_forward(tokens, params, nh, actor=True):
    b, l = tokens.shape
    x = params["emb"][tokens]
    mask = params["mask"][:l, :l] if actor else None
    d = x.shape[-1]
    dh = d // nh
    for p in params["layers"]:
        mu = x.mean(-1, keepdims=True)
        var = ((x - mu) ** 2).mean(-1, keepdims=True)
        ln = (x - mu) / jnp.sqrt(var + LN_EPS) * p["ln_g"][0] + p["ln_b"][0]
        proj = ln @ p["wx"] + p["bx"][0]
        qkv = proj.reshape(b, l, 3, nh, dh).transpose(2, 0, 3, 1, 4)
        q, k, v = qkv[0], qkv[1], qkv[2]
        s = jnp.einsum('bhic,bhjc->bhij', q, k)
        if mask is not None:
            s = s + mask
        a = jax.nn.softmax(s / math.sqrt(d), axis=-1)
        heads = jnp.einsum('bhij,bhjc->bhic', a, v)
        heads = heads.transpose(0, 2, 1, 3).reshape(b, l, d)
        attn = heads @ p["wo"] + p["bo"][0]
        x = jax.nn.gelu(x + attn, approximate=False)
    if not actor:
        vals = x @ params["critic_w"] + params["critic_b"][0, 0]   # [b, l, 1]
        return vals[..., 0].sum(-1)
    logits = x[:, -1] @ params["actor_w"] + params["actor_b"][0]
    return jax.nn.softmax(logits, axis=-1)


if __name__ == "__main__":
    D, NH, NL, L, V = 32, 4, 2, 8, 64
    B = 2
    key = jax.random.PRNGKey(0)
    kp, kt = jax.random.split(key)
    params = init_params(kp, D, NH, NL, L, V)
    prepared = prepare_params(params, NH)       # one-time weight packing
    tokens = jax.random.randint(kt, (B, L), 0, V, dtype=jnp.int32)

    probs = jax.block_until_ready(lm_forward(tokens, prepared, NH, actor=True))
    values = jax.block_until_ready(lm_forward(tokens, prepared, NH, actor=False))

    ref_probs = ref_forward(tokens, params, NH, actor=True)
    ref_values = ref_forward(tokens, params, NH, actor=False)

    assert probs.shape == (B, V) and values.shape == (B,)
    # bf16 MXU operands (f32 accumulation) vs. f32 reference => bf16-level tolerance.
    assert jnp.allclose(probs, ref_probs, atol=2e-2, rtol=2e-2), \
        float(jnp.max(jnp.abs(probs - ref_probs)))
    assert jnp.allclose(values, ref_values, atol=5e-2, rtol=5e-2), \
        float(jnp.max(jnp.abs(values - ref_values)))
    print("KERNEL_OK")
</pallas_src>

<mosaic_0001>
module attributes {stable_mosaic.version = 11 : i64} {
  func.func @_layers_kernel(%arg0: i32, %arg1: i32, %arg2: memref<1x8x32xf32, #tpu.memory_space<vmem>>, %arg3: memref<1x1x32xf32, #tpu.memory_space<vmem>>, %arg4: memref<1x1x32xf32, #tpu.memory_space<vmem>>, %arg5: memref<1x32x96xbf16, #tpu.memory_space<vmem>>, %arg6: memref<1x1x96xf32, #tpu.memory_space<vmem>>, %arg7: memref<1x4x8x32xbf16, #tpu.memory_space<vmem>>, %arg8: memref<1x1x32xf32, #tpu.memory_space<vmem>>, %arg9: memref<1x8x32xf32, #tpu.memory_space<vmem>>) attributes {dimension_semantics = [#tpu.dimension_semantics<parallel>, #tpu.dimension_semantics<arbitrary>], iteration_bounds = array<i64: 2, 2>, scalar_prefetch = 0 : i64, scratch_operands = 0 : i64, tpu.core_type = #tpu.core_type<tc>, window_params = [{transform_indices = @transform_0, window_bounds = array<i64: 1, 8, 32>}, {transform_indices = @transform_1, window_bounds = array<i64: 1, 1, 32>}, {transform_indices = @transform_2, window_bounds = array<i64: 1, 1, 32>}, {transform_indices = @transform_3, window_bounds = array<i64: 1, 32, 96>}, {transform_indices = @transform_4, window_bounds = array<i64: 1, 1, 96>}, {transform_indices = @transform_5, window_bounds = array<i64: 1, 4, 8, 32>}, {transform_indices = @transform_6, window_bounds = array<i64: 1, 1, 32>}, {transform_indices = @transform_7, window_bounds = array<i64: 1, 8, 32>}]} {
    %c0_i32 = arith.constant 0 : i32
    %0 = arith.cmpi eq, %arg1, %c0_i32 : i32
    %1 = arith.extui %0 : i1 to i32
    %c0_i32_0 = arith.constant 0 : i32
    %2 = arith.cmpi ne, %1, %c0_i32_0 : i32
    scf.if %2 {
      %c0_70 = arith.constant 0 : index
      %c0_71 = arith.constant 0 : index
      %c0_72 = arith.constant 0 : index
      %173 = vector.load %arg2[%c0_70, %c0_71, %c0_72] : memref<1x8x32xf32, #tpu.memory_space<vmem>>, vector<1x8x32xf32>
      %c0_73 = arith.constant 0 : index
      %c0_74 = arith.constant 0 : index
      %c0_75 = arith.constant 0 : index
      %174 = vector.load %arg9[%c0_73, %c0_74, %c0_75] : memref<1x8x32xf32, #tpu.memory_space<vmem>>, vector<1x8x32xf32>
      tpu.vector_store %arg9[%c0_73, %c0_74, %c0_75], %173 {strides = array<i32>} : memref<1x8x32xf32, #tpu.memory_space<vmem>>, vector<1x8x32xf32>,
    } else {
    }
    %c0 = arith.constant 0 : index
    %c0_1 = arith.constant 0 : index
    %c0_2 = arith.constant 0 : index
    %3 = vector.load %arg9[%c0, %c0_1, %c0_2] : memref<1x8x32xf32, #tpu.memory_space<vmem>>, vector<1x8x32xf32>
    %cst = arith.constant dense<0.000000e+00> : vector<1x8xf32>
    %4 = vector.multi_reduction <add>, %3, %cst [2] : vector<1x8x32xf32> to vector<1x8xf32>
    %5 = vector.shape_cast %4 : vector<1x8xf32> to vector<1x8x1xf32>
    %cst_3 = arith.constant 3.200000e+01 : f32
    %6 = vector.broadcast %cst_3 : f32 to vector<1x8x1xf32>
    %7 = arith.divf %5, %6 : vector<1x8x1xf32>
    %8 = vector.broadcast %7 : vector<1x8x1xf32> to vector<1x8x32xf32>
    %9 = arith.subf %3, %8 : vector<1x8x32xf32>
    %10 = arith.mulf %9, %9 : vector<1x8x32xf32>
    %cst_4 = arith.constant dense<0.000000e+00> : vector<1x8xf32>
    %11 = vector.multi_reduction <add>, %10, %cst_4 [2] : vector<1x8x32xf32> to vector<1x8xf32>
    %12 = vector.shape_cast %11 : vector<1x8xf32> to vector<1x8x1xf32>
    %cst_5 = arith.constant 3.200000e+01 : f32
    %13 = vector.broadcast %cst_5 : f32 to vector<1x8x1xf32>
    %14 = arith.divf %12, %13 : vector<1x8x1xf32>
    %cst_6 = arith.constant 9.99999974E-6 : f32
    %15 = vector.broadcast %cst_6 : f32 to vector<1x8x1xf32>
    %16 = arith.addf %14, %15 : vector<1x8x1xf32>
    %17 = math.rsqrt %16 : vector<1x8x1xf32>
    %18 = vector.broadcast %17 : vector<1x8x1xf32> to vector<1x8x32xf32>
    %19 = arith.mulf %9, %18 : vector<1x8x32xf32>
    %c0_7 = arith.constant 0 : index
    %c0_8 = arith.constant 0 : index
    %c0_9 = arith.constant 0 : index
    %20 = vector.load %arg3[%c0_7, %c0_8, %c0_9] : memref<1x1x32xf32, #tpu.memory_space<vmem>>, vector<1x1x32xf32>
    %21 = vector.shape_cast %20 : vector<1x1x32xf32> to vector<1x32xf32>
    %22 = vector.shape_cast %21 : vector<1x32xf32> to vector<1x1x32xf32>
    %23 = vector.broadcast %22 : vector<1x1x32xf32> to vector<1x8x32xf32>
    %24 = arith.mulf %19, %23 : vector<1x8x32xf32>
    %c0_10 = arith.constant 0 : index
    %c0_11 = arith.constant 0 : index
    %c0_12 = arith.constant 0 : index
    %25 = vector.load %arg4[%c0_10, %c0_11, %c0_12] : memref<1x1x32xf32, #tpu.memory_space<vmem>>, vector<1x1x32xf32>
    %26 = vector.shape_cast %25 : vector<1x1x32xf32> to vector<1x32xf32>
    %27 = vector.shape_cast %26 : vector<1x32xf32> to vector<1x1x32xf32>
    %28 = vector.broadcast %27 : vector<1x1x32xf32> to vector<1x8x32xf32>
    %29 = arith.addf %24, %28 : vector<1x8x32xf32>
    %30 = vector.shape_cast %29 : vector<1x8x32xf32> to vector<8x32xf32>
    %31 = arith.truncf %30 : vector<8x32xf32> to vector<8x32xbf16>
    %c0_13 = arith.constant 0 : index
    %c0_14 = arith.constant 0 : index
    %c0_15 = arith.constant 0 : index
    %32 = vector.load %arg5[%c0_13, %c0_14, %c0_15] : memref<1x32x96xbf16, #tpu.memory_space<vmem>>, vector<1x32x96xbf16>
    %33 = vector.shape_cast %32 : vector<1x32x96xbf16> to vector<32x96xbf16>
    %cst_16 = arith.constant dense<0.000000e+00> : vector<8x96xf32>
    %34 = tpu.matmul %31, %33, %cst_16 {dimension_numbers = #tpu.dot_dimension_numbers<[1], [0], [0], [1], [0, 0, 1, 1], [], []>} : vector<8x32xbf16>, vector<32x96xbf16>, vector<8x96xf32> -> vector<8x96xf32>
    %c0_17 = arith.constant 0 : index
    %c0_18 = arith.constant 0 : index
    %c0_19 = arith.constant 0 : index
    %35 = vector.load %arg6[%c0_17, %c0_18, %c0_19] : memref<1x1x96xf32, #tpu.memory_space<vmem>>, vector<1x1x96xf32>
    %36 = vector.shape_cast %35 : vector<1x1x96xf32> to vector<1x96xf32>
    %37 = vector.broadcast %36 : vector<1x96xf32> to vector<8x96xf32>
    %38 = arith.addf %34, %37 : vector<8x96xf32>
    %39 = vector.shape_cast %38 : vector<8x96xf32> to vector<1x8x96xf32>
    %40 = tpu.iota {dimensions = array<i32: 1>} : vector<1x8x8xi32>
    %41 = tpu.iota {dimensions = array<i32: 2>} : vector<1x8x8xi32>
    %42 = arith.cmpi sle, %41, %40 : vector<1x8x8xi32>
    %43 = vector.extract_strided_slice %39 {offsets = [0, 0, 0], sizes = [1, 8, 8], strides = [1, 1, 1]} : vector<1x8x96xf32> to vector<1x8x8xf32>
    %44 = arith.truncf %43 : vector<1x8x8xf32> to vector<1x8x8xbf16>
    %45 = vector.extract_strided_slice %39 {offsets = [0, 0, 32], sizes = [1, 8, 8], strides = [1, 1, 1]} : vector<1x8x96xf32> to vector<1x8x8xf32>
    %46 = arith.truncf %45 : vector<1x8x8xf32> to vector<1x8x8xbf16>
    %47 = vector.extract_strided_slice %39 {offsets = [0, 0, 64], sizes = [1, 8, 8], strides = [1, 1, 1]} : vector<1x8x96xf32> to vector<1x8x8xf32>
    %48 = arith.truncf %47 : vector<1x8x8xf32> to vector<1x8x8xbf16>
    "tpu.trace_start"() <{level = 10 : i32, message = "bik,bjk->bij"}> : () -> ()
    %cst_20 = arith.constant dense<0.000000e+00> : vector<1x8x8xf32>
    %49 = tpu.matmul %44, %46, %cst_20 {dimension_numbers = #tpu.dot_dimension_numbers<[2], [2], [1], [1], [0, 0, 0, 1, 1, 1], [0], [0]>} : vector<1x8x8xbf16>, vector<1x8x8xbf16>, vector<1x8x8xf32> -> vector<1x8x8xf32>
    "tpu.trace_stop"() : () -> ()
    %cst_21 = arith.constant 0.176776692 : f32
    %50 = vector.broadcast %cst_21 : f32 to vector<1x8x8xf32>
    %51 = arith.mulf %49, %50 : vector<1x8x8xf32>
    %cst_22 = arith.constant -1.000000e+30 : f32
    %52 = vector.broadcast %cst_22 : f32 to vector<1x8x8xf32>
    %53 = arith.select %42, %51, %52 : vector<1x8x8xi1>, vector<1x8x8xf32>
    %cst_23 = arith.constant dense<0xFF800000> : vector<1x8xf32>
    %54 = vector.multi_reduction <maximumf>, %53, %cst_23 [2] : vector<1x8x8xf32> to vector<1x8xf32>
    %55 = vector.shape_cast %54 : vector<1x8xf32> to vector<1x8x1xf32>
    %56 = vector.broadcast %55 : vector<1x8x1xf32> to vector<1x8x8xf32>
    %57 = arith.subf %53, %56 : vector<1x8x8xf32>
    %58 = math.exp %57 : vector<1x8x8xf32>
    %cst_24 = arith.constant dense<0.000000e+00> : vector<1x8xf32>
    %59 = vector.multi_reduction <add>, %58, %cst_24 [2] : vector<1x8x8xf32> to vector<1x8xf32>
    %60 = vector.shape_cast %59 : vector<1x8xf32> to vector<1x8x1xf32>
    %61 = tpu.reciprocal %60 {approx = true} : vector<1x8x1xf32> -> vector<1x8x1xf32>
    %62 = vector.broadcast %61 : vector<1x8x1xf32> to vector<1x8x8xf32>
    %63 = arith.mulf %58, %62 : vector<1x8x8xf32>
    %64 = arith.truncf %63 : vector<1x8x8xf32> to vector<1x8x8xbf16>
    "tpu.trace_start"() <{level = 10 : i32, message = "bij,bjk->bik"}> : () -> ()
    %cst_25 = arith.constant dense<0.000000e+00> : vector<1x8x8xf32>
    %65 = tpu.matmul %64, %48, %cst_25 {dimension_numbers = #tpu.dot_dimension_numbers<[2], [1], [1], [2], [0, 0, 0, 1, 1, 2], [0], [0]>} : vector<1x8x8xbf16>, vector<1x8x8xbf16>, vector<1x8x8xf32> -> vector<1x8x8xf32>
    "tpu.trace_stop"() : () -> ()
    %66 = vector.shape_cast %65 : vector<1x8x8xf32> to vector<8x8xf32>
    %67 = arith.truncf %66 : vector<8x8xf32> to vector<8x8xbf16>
    %c0_26 = arith.constant 0 : index
    %c0_27 = arith.constant 0 : index
    %c0_28 = arith.constant 0 : index
    %c0_29 = arith.constant 0 : index
    %68 = vector.load %arg7[%c0_26, %c0_27, %c0_28, %c0_29] : memref<1x4x8x32xbf16, #tpu.memory_space<vmem>>, vector<1x1x8x32xbf16>
    %69 = vector.shape_cast %68 : vector<1x1x8x32xbf16> to vector<8x32xbf16>
    %cst_30 = arith.constant dense<0.000000e+00> : vector<8x32xf32>
    %70 = tpu.matmul %67, %69, %cst_30 {dimension_numbers = #tpu.dot_dimension_numbers<[1], [0], [0], [1], [0, 0, 1, 1], [], []>} : vector<8x8xbf16>, vector<8x32xbf16>, vector<8x32xf32> -> vector<8x32xf32>
    %71 = vector.extract_strided_slice %39 {offsets = [0, 0, 8], sizes = [1, 8, 8], strides = [1, 1, 1]} : vector<1x8x96xf32> to vector<1x8x8xf32>
    %72 = arith.truncf %71 : vector<1x8x8xf32> to vector<1x8x8xbf16>
    %73 = vector.extract_strided_slice %39 {offsets = [0, 0, 40], sizes = [1, 8, 8], strides = [1, 1, 1]} : vector<1x8x96xf32> to vector<1x8x8xf32>
    %74 = arith.truncf %73 : vector<1x8x8xf32> to vector<1x8x8xbf16>
    %75 = vector.extract_strided_slice %39 {offsets = [0, 0, 72], sizes = [1, 8, 8], strides = [1, 1, 1]} : vector<1x8x96xf32> to vector<1x8x8xf32>
    %76 = arith.truncf %75 : vector<1x8x8xf32> to vector<1x8x8xbf16>
    "tpu.trace_start"() <{level = 10 : i32, message = "bik,bjk->bij"}> : () -> ()
    %cst_31 = arith.constant dense<0.000000e+00> : vector<1x8x8xf32>
    %77 = tpu.matmul %72, %74, %cst_31 {dimension_numbers = #tpu.dot_dimension_numbers<[2], [2], [1], [1], [0, 0, 0, 1, 1, 1], [0], [0]>} : vector<1x8x8xbf16>, vector<1x8x8xbf16>, vector<1x8x8xf32> -> vector<1x8x8xf32>
    "tpu.trace_stop"() : () -> ()
    %cst_32 = arith.constant 0.176776692 : f32
    %78 = vector.broadcast %cst_32 : f32 to vector<1x8x8xf32>
    %79 = arith.mulf %77, %78 : vector<1x8x8xf32>
    %cst_33 = arith.constant -1.000000e+30 : f32
    %80 = vector.broadcast %cst_33 : f32 to vector<1x8x8xf32>
    %81 = arith.select %42, %79, %80 : vector<1x8x8xi1>, vector<1x8x8xf32>
    %cst_34 = arith.constant dense<0xFF800000> : vector<1x8xf32>
    %82 = vector.multi_reduction <maximumf>, %81, %cst_34 [2] : vector<1x8x8xf32> to vector<1x8xf32>
    %83 = vector.shape_cast %82 : vector<1x8xf32> to vector<1x8x1xf32>
    %84 = vector.broadcast %83 : vector<1x8x1xf32> to vector<1x8x8xf32>
    %85 = arith.subf %81, %84 : vector<1x8x8xf32>
    %86 = math.exp %85 : vector<1x8x8xf32>
    %cst_35 = arith.constant dense<0.000000e+00> : vector<1x8xf32>
    %87 = vector.multi_reduction <add>, %86, %cst_35 [2] : vector<1x8x8xf32> to vector<1x8xf32>
    %88 = vector.shape_cast %87 : vector<1x8xf32> to vector<1x8x1xf32>
    %89 = tpu.reciprocal %88 {approx = true} : vector<1x8x1xf32> -> vector<1x8x1xf32>
    %90 = vector.broadcast %89 : vector<1x8x1xf32> to vector<1x8x8xf32>
    %91 = arith.mulf %86, %90 : vector<1x8x8xf32>
    %92 = arith.truncf %91 : vector<1x8x8xf32> to vector<1x8x8xbf16>
    "tpu.trace_start"() <{level = 10 : i32, message = "bij,bjk->bik"}> : () -> ()
    %cst_36 = arith.constant dense<0.000000e+00> : vector<1x8x8xf32>
    %93 = tpu.matmul %92, %76, %cst_36 {dimension_numbers = #tpu.dot_dimension_numbers<[2], [1], [1], [2], [0, 0, 0, 1, 1, 2], [0], [0]>} : vector<1x8x8xbf16>, vector<1x8x8xbf16>, vector<1x8x8xf32> -> vector<1x8x8xf32>
    "tpu.trace_stop"() : () -> ()
    %94 = vector.shape_cast %93 : vector<1x8x8xf32> to vector<8x8xf32>
    %95 = arith.truncf %94 : vector<8x8xf32> to vector<8x8xbf16>
    %c0_37 = arith.constant 0 : index
    %c1 = arith.constant 1 : index
    %c0_38 = arith.constant 0 : index
    %c0_39 = arith.constant 0 : index
    %96 = vector.load %arg7[%c0_37, %c1, %c0_38, %c0_39] : memref<1x4x8x32xbf16, #tpu.memory_space<vmem>>, vector<1x1x8x32xbf16>
    %97 = vector.shape_cast %96 : vector<1x1x8x32xbf16> to vector<8x32xbf16>
    %cst_40 = arith.constant dense<0.000000e+00> : vector<8x32xf32>
    %98 = tpu.matmul %95, %97, %cst_40 {dimension_numbers = #tpu.dot_dimension_numbers<[1], [0], [0], [1], [0, 0, 1, 1], [], []>} : vector<8x8xbf16>, vector<8x32xbf16>, vector<8x32xf32> -> vector<8x32xf32>
    %99 = arith.addf %70, %98 : vector<8x32xf32>
    %100 = vector.extract_strided_slice %39 {offsets = [0, 0, 16], sizes = [1, 8, 8], strides = [1, 1, 1]} : vector<1x8x96xf32> to vector<1x8x8xf32>
    %101 = arith.truncf %100 : vector<1x8x8xf32> to vector<1x8x8xbf16>
    %102 = vector.extract_strided_slice %39 {offsets = [0, 0, 48], sizes = [1, 8, 8], strides = [1, 1, 1]} : vector<1x8x96xf32> to vector<1x8x8xf32>
    %103 = arith.truncf %102 : vector<1x8x8xf32> to vector<1x8x8xbf16>
    %104 = vector.extract_strided_slice %39 {offsets = [0, 0, 80], sizes = [1, 8, 8], strides = [1, 1, 1]} : vector<1x8x96xf32> to vector<1x8x8xf32>
    %105 = arith.truncf %104 : vector<1x8x8xf32> to vector<1x8x8xbf16>
    "tpu.trace_start"() <{level = 10 : i32, message = "bik,bjk->bij"}> : () -> ()
    %cst_41 = arith.constant dense<0.000000e+00> : vector<1x8x8xf32>
    %106 = tpu.matmul %101, %103, %cst_41 {dimension_numbers = #tpu.dot_dimension_numbers<[2], [2], [1], [1], [0, 0, 0, 1, 1, 1], [0], [0]>} : vector<1x8x8xbf16>, vector<1x8x8xbf16>, vector<1x8x8xf32> -> vector<1x8x8xf32>
    "tpu.trace_stop"() : () -> ()
    %cst_42 = arith.constant 0.176776692 : f32
    %107 = vector.broadcast %cst_42 : f32 to vector<1x8x8xf32>
    %108 = arith.mulf %106, %107 : vector<1x8x8xf32>
    %cst_43 = arith.constant -1.000000e+30 : f32
    %109 = vector.broadcast %cst_43 : f32 to vector<1x8x8xf32>
    %110 = arith.select %42, %108, %109 : vector<1x8x8xi1>, vector<1x8x8xf32>
    %cst_44 = arith.constant dense<0xFF800000> : vector<1x8xf32>
    %111 = vector.multi_reduction <maximumf>, %110, %cst_44 [2] : vector<1x8x8xf32> to vector<1x8xf32>
    %112 = vector.shape_cast %111 : vector<1x8xf32> to vector<1x8x1xf32>
    %113 = vector.broadcast %112 : vector<1x8x1xf32> to vector<1x8x8xf32>
    %114 = arith.subf %110, %113 : vector<1x8x8xf32>
    %115 = math.exp %114 : vector<1x8x8xf32>
    %cst_45 = arith.constant dense<0.000000e+00> : vector<1x8xf32>
    %116 = vector.multi_reduction <add>, %115, %cst_45 [2] : vector<1x8x8xf32> to vector<1x8xf32>
    %117 = vector.shape_cast %116 : vector<1x8xf32> to vector<1x8x1xf32>
    %118 = tpu.reciprocal %117 {approx = true} : vector<1x8x1xf32> -> vector<1x8x1xf32>
    %119 = vector.broadcast %118 : vector<1x8x1xf32> to vector<1x8x8xf32>
    %120 = arith.mulf %115, %119 : vector<1x8x8xf32>
    %121 = arith.truncf %120 : vector<1x8x8xf32> to vector<1x8x8xbf16>
    "tpu.trace_start"() <{level = 10 : i32, message = "bij,bjk->bik"}> : () -> ()
    %cst_46 = arith.constant dense<0.000000e+00> : vector<1x8x8xf32>
    %122 = tpu.matmul %121, %105, %cst_46 {dimension_numbers = #tpu.dot_dimension_numbers<[2], [1], [1], [2], [0, 0, 0, 1, 1, 2], [0], [0]>} : vector<1x8x8xbf16>, vector<1x8x8xbf16>, vector<1x8x8xf32> -> vector<1x8x8xf32>
    "tpu.trace_stop"() : () -> ()
    %123 = vector.shape_cast %122 : vector<1x8x8xf32> to vector<8x8xf32>
    %124 = arith.truncf %123 : vector<8x8xf32> to vector<8x8xbf16>
    %c0_47 = arith.constant 0 : index
    %c2 = arith.constant 2 : index
    %c0_48 = arith.constant 0 : index
    %c0_49 = arith.constant 0 : index
    %125 = vector.load %arg7[%c0_47, %c2, %c0_48, %c0_49] : memref<1x4x8x32xbf16, #tpu.memory_space<vmem>>, vector<1x1x8x32xbf16>
    %126 = vector.shape_cast %125 : vector<1x1x8x32xbf16> to vector<8x32xbf16>
    %cst_50 = arith.constant dense<0.000000e+00> : vector<8x32xf32>
    %127 = tpu.matmul %124, %126, %cst_50 {dimension_numbers = #tpu.dot_dimension_numbers<[1], [0], [0], [1], [0, 0, 1, 1], [], []>} : vector<8x8xbf16>, vector<8x32xbf16>, vector<8x32xf32> -> vector<8x32xf32>
    %128 = arith.addf %99, %127 : vector<8x32xf32>
    %129 = vector.extract_strided_slice %39 {offsets = [0, 0, 24], sizes = [1, 8, 8], strides = [1, 1, 1]} : vector<1x8x96xf32> to vector<1x8x8xf32>
    %130 = arith.truncf %129 : vector<1x8x8xf32> to vector<1x8x8xbf16>
    %131 = vector.extract_strided_slice %39 {offsets = [0, 0, 56], sizes = [1, 8, 8], strides = [1, 1, 1]} : vector<1x8x96xf32> to vector<1x8x8xf32>
    %132 = arith.truncf %131 : vector<1x8x8xf32> to vector<1x8x8xbf16>
    %133 = vector.extract_strided_slice %39 {offsets = [0, 0, 88], sizes = [1, 8, 8], strides = [1, 1, 1]} : vector<1x8x96xf32> to vector<1x8x8xf32>
    %134 = arith.truncf %133 : vector<1x8x8xf32> to vector<1x8x8xbf16>
    "tpu.trace_start"() <{level = 10 : i32, message = "bik,bjk->bij"}> : () -> ()
    %cst_51 = arith.constant dense<0.000000e+00> : vector<1x8x8xf32>
    %135 = tpu.matmul %130, %132, %cst_51 {dimension_numbers = #tpu.dot_dimension_numbers<[2], [2], [1], [1], [0, 0, 0, 1, 1, 1], [0], [0]>} : vector<1x8x8xbf16>, vector<1x8x8xbf16>, vector<1x8x8xf32> -> vector<1x8x8xf32>
    "tpu.trace_stop"() : () -> ()
    %cst_52 = arith.constant 0.176776692 : f32
    %136 = vector.broadcast %cst_52 : f32 to vector<1x8x8xf32>
    %137 = arith.mulf %135, %136 : vector<1x8x8xf32>
    %cst_53 = arith.constant -1.000000e+30 : f32
    %138 = vector.broadcast %cst_53 : f32 to vector<1x8x8xf32>
    %139 = arith.select %42, %137, %138 : vector<1x8x8xi1>, vector<1x8x8xf32>
    %cst_54 = arith.constant dense<0xFF800000> : vector<1x8xf32>
    %140 = vector.multi_reduction <maximumf>, %139, %cst_54 [2] : vector<1x8x8xf32> to vector<1x8xf32>
    %141 = vector.shape_cast %140 : vector<1x8xf32> to vector<1x8x1xf32>
    %142 = vector.broadcast %141 : vector<1x8x1xf32> to vector<1x8x8xf32>
    %143 = arith.subf %139, %142 : vector<1x8x8xf32>
    %144 = math.exp %143 : vector<1x8x8xf32>
    %cst_55 = arith.constant dense<0.000000e+00> : vector<1x8xf32>
    %145 = vector.multi_reduction <add>, %144, %cst_55 [2] : vector<1x8x8xf32> to vector<1x8xf32>
    %146 = vector.shape_cast %145 : vector<1x8xf32> to vector<1x8x1xf32>
    %147 = tpu.reciprocal %146 {approx = true} : vector<1x8x1xf32> -> vector<1x8x1xf32>
    %148 = vector.broadcast %147 : vector<1x8x1xf32> to vector<1x8x8xf32>
    %149 = arith.mulf %144, %148 : vector<1x8x8xf32>
    %150 = arith.truncf %149 : vector<1x8x8xf32> to vector<1x8x8xbf16>
    "tpu.trace_start"() <{level = 10 : i32, message = "bij,bjk->bik"}> : () -> ()
    %cst_56 = arith.constant dense<0.000000e+00> : vector<1x8x8xf32>
    %151 = tpu.matmul %150, %134, %cst_56 {dimension_numbers = #tpu.dot_dimension_numbers<[2], [1], [1], [2], [0, 0, 0, 1, 1, 2], [0], [0]>} : vector<1x8x8xbf16>, vector<1x8x8xbf16>, vector<1x8x8xf32> -> vector<1x8x8xf32>
    "tpu.trace_stop"() : () -> ()
    %152 = vector.shape_cast %151 : vector<1x8x8xf32> to vector<8x8xf32>
    %153 = arith.truncf %152 : vector<8x8xf32> to vector<8x8xbf16>
    %c0_57 = arith.constant 0 : index
    %c3 = arith.constant 3 : index
    %c0_58 = arith.constant 0 : index
    %c0_59 = arith.constant 0 : index
    %154 = vector.load %arg7[%c0_57, %c3, %c0_58, %c0_59] : memref<1x4x8x32xbf16, #tpu.memory_space<vmem>>, vector<1x1x8x32xbf16>
    %155 = vector.shape_cast %154 : vector<1x1x8x32xbf16> to vector<8x32xbf16>
    %cst_60 = arith.constant dense<0.000000e+00> : vector<8x32xf32>
    %156 = tpu.matmul %153, %155, %cst_60 {dimension_numbers = #tpu.dot_dimension_numbers<[1], [0], [0], [1], [0, 0, 1, 1], [], []>} : vector<8x8xbf16>, vector<8x32xbf16>, vector<8x32xf32> -> vector<8x32xf32>
    %157 = arith.addf %128, %156 : vector<8x32xf32>
    %c0_61 = arith.constant 0 : index
    %c0_62 = arith.constant 0 : index
    %c0_63 = arith.constant 0 : index
    %158 = vector.load %arg8[%c0_61, %c0_62, %c0_63] : memref<1x1x32xf32, #tpu.memory_space<vmem>>, vector<1x1x32xf32>
    %159 = vector.shape_cast %158 : vector<1x1x32xf32> to vector<1x32xf32>
    %160 = vector.broadcast %159 : vector<1x32xf32> to vector<8x32xf32>
    %161 = arith.addf %157, %160 : vector<8x32xf32>
    %162 = vector.shape_cast %161 : vector<8x32xf32> to vector<1x8x32xf32>
    %163 = arith.addf %3, %162 : vector<1x8x32xf32>
    %cst_64 = arith.constant 5.000000e-01 : f32
    %164 = vector.broadcast %cst_64 : f32 to vector<1x8x32xf32>
    %165 = arith.mulf %164, %163 : vector<1x8x32xf32>
    %cst_65 = arith.constant 1.41421354 : f32
    %166 = vector.broadcast %cst_65 : f32 to vector<1x8x32xf32>
    %167 = arith.divf %163, %166 : vector<1x8x32xf32>
    %168 = math.erf %167 : vector<1x8x32xf32>
    %cst_66 = arith.constant 1.000000e+00 : f32
    %169 = vector.broadcast %cst_66 : f32 to vector<1x8x32xf32>
    %170 = arith.addf %169, %168 : vector<1x8x32xf32>
    %171 = arith.mulf %165, %170 : vector<1x8x32xf32>
    %c0_67 = arith.constant 0 : index
    %c0_68 = arith.constant 0 : index
    %c0_69 = arith.constant 0 : index
    %172 = vector.load %arg9[%c0_67, %c0_68, %c0_69] : memref<1x8x32xf32, #tpu.memory_space<vmem>>, vector<1x8x32xf32>
    tpu.vector_store %arg9[%c0_67, %c0_68, %c0_69], %171 {strides = array<i32>} : memref<1x8x32xf32, #tpu.memory_space<vmem>>, vector<1x8x32xf32>,
    return
  }
  func.func @transform_0(%arg0: i32, %arg1: i32) -> (i32, i32, i32) {
    %c0_i32 = arith.constant 0 : i32
    %c0_i32_0 = arith.constant 0 : i32
    %c0_i32_1 = arith.constant 0 : i32
    return %arg0, %c0_i32, %c0_i32_0 : i32, i32, i32
  }
  func.func @transform_1(%arg0: i32, %arg1: i32) -> (i32, i32, i32) {
    %c0_i32 = arith.constant 0 : i32
    %c0_i32_0 = arith.constant 0 : i32
    %c0_i32_1 = arith.constant 0 : i32
    return %arg1, %c0_i32, %c0_i32_0 : i32, i32, i32
  }
  func.func @transform_2(%arg0: i32, %arg1: i32) -> (i32, i32, i32) {
    %c0_i32 = arith.constant 0 : i32
    %c0_i32_0 = arith.constant 0 : i32
    %c0_i32_1 = arith.constant 0 : i32
    return %arg1, %c0_i32, %c0_i32_0 : i32, i32, i32
  }
  func.func @transform_3(%arg0: i32, %arg1: i32) -> (i32, i32, i32) {
    %c0_i32 = arith.constant 0 : i32
    %c0_i32_0 = arith.constant 0 : i32
    %c0_i32_1 = arith.constant 0 : i32
    return %arg1, %c0_i32, %c0_i32_0 : i32, i32, i32
  }
  func.func @transform_4(%arg0: i32, %arg1: i32) -> (i32, i32, i32) {
    %c0_i32 = arith.constant 0 : i32
    %c0_i32_0 = arith.constant 0 : i32
    %c0_i32_1 = arith.constant 0 : i32
    return %arg1, %c0_i32, %c0_i32_0 : i32, i32, i32
  }
  func.func @transform_5(%arg0: i32, %arg1: i32) -> (i32, i32, i32, i32) {
    %c0_i32 = arith.constant 0 : i32
    %c0_i32_0 = arith.constant 0 : i32
    %c0_i32_1 = arith.constant 0 : i32
    %c0_i32_2 = arith.constant 0 : i32
    return %arg1, %c0_i32, %c0_i32_0, %c0_i32_1 : i32, i32, i32, i32
  }
  func.func @transform_6(%arg0: i32, %arg1: i32) -> (i32, i32, i32) {
    %c0_i32 = arith.constant 0 : i32
    %c0_i32_0 = arith.constant 0 : i32
    %c0_i32_1 = arith.constant 0 : i32
    return %arg1, %c0_i32, %c0_i32_0 : i32, i32, i32
  }
  func.func @transform_7(%arg0: i32, %arg1: i32) -> (i32, i32, i32) {
    %c0_i32 = arith.constant 0 : i32
    %c0_i32_0 = arith.constant 0 : i32
    %c0_i32_1 = arith.constant 0 : i32
    return %arg0, %c0_i32, %c0_i32_0 : i32, i32, i32
  }
}

</mosaic_0001>

<bundles_post_ra>
// kernel: tpu_custom_call.1
= control target key start
LH: loop header
LB: loop body
LE: loop exit
PB: predicated region body
PF: predicated region fallthrough
CT: control target
= control target key end

     0   :  { %s2108_s0 = inlined_call_operand.hbm [shape: f32[2,8,32], index: 0, kind: input, shape index: {}]   ;;  %s2109_s1 = inlined_call_operand.hbm [shape: f32[2,1,32], index: 1, kind: input, shape index: {}]   ;;  %s2110_s2 = inlined_call_operand.hbm [shape: f32[2,1,32], index: 2, kind: input, shape index: {}]   ;;  %s2111_s3 = inlined_call_operand.hbm [shape: bf16[2,32,96], index: 3, kind: input, shape index: {}]   ;;  %s2112_s4 = inlined_call_operand.vmem [shape: f32[2,1,96], index: 4, kind: input, shape index: {}]   ;;  %s2113_s5 = inlined_call_operand.hbm [shape: bf16[2,4,8,32], index: 5, kind: input, shape index: {}]   ;;  %s2114_s6 = inlined_call_operand.vmem [shape: f32[2,1,32], index: 6, kind: input, shape index: {}]   ;;  %s2115_s7 = inlined_call_operand.hbm [shape: f32[2,8,32], index: 7, kind: output, shape index: {}]  }
   0x1   :  { %2127 = sst [smem:[#allocation26_spill]] %s2108_s0 }
   0x2   :  { %2128 = sst [smem:[#allocation27_spill]] %s2109_s1 }
   0x3   :  { %2129 = sst [smem:[#allocation28_spill]] %s2111_s3 }
   0x4   :  { %2130 = sst [smem:[#allocation29_spill]] %s2112_s4 }
   0x5   :  { %2131 = sst [smem:[#allocation30_spill]] %s2113_s5 }
   0x6   :  { %2132 = sst [smem:[#allocation31_spill]] %s2114_s6 }
   0x7   :  { %2133 = sst [smem:[#allocation32_spill]] %s2115_s7 }
   0x8   :  { %12 = vsyncpa [#allocation3], 0 }
   0x9   :  { %14 = vsyncpa [#allocation3 + $0x1], 0 }
   0xa   :  { %15 = vsyncpa [#allocation6], 0 }
   0xb   :  { %17 = vsyncpa [#allocation6 + $0x1], 0 }
   0xc   :  { %18 = vsyncpa [#allocation9], 0 }
   0xd   :  { %20 = vsyncpa [#allocation9 + $0x1], 0 }
   0xe   :  { %21 = vsyncpa [#allocation4], 0 }
   0xf   :  { %23 = vsyncpa [#allocation4 + $0x1], 0  ;;  %s1704_s24 = smov 0   ;;  %s1706_s25 = smov 0  }
  0x10   :  { %s1708_s26 = smov 0   ;;  %s1710_s27 = smov 0  }
  0x11   :  { %s1712_s28 = smov 0   ;;  %s1714_s29 = smov 0  }
  0x12   :  { %s1716_s30 = smov 0   ;;  %s1718_s8 = smov 0  }
  0x13   :  { %s1720_s9 = smov 0   ;;  %s1722_s10 = smov 0  }
  0x14   :  { %s1724_s11 = smov 0  }
  0x15 LB: > { %2134 = sst [smem:[#allocation16_spill]] %s1615_s26  ;;  %s38_s12 = sadd.s32 1, %s1639_s9  ;;  %s1647_s11 = sphi %s1724_s11, %s29_s11   ;;  %s1643_s10 = sphi %s1722_s10, %s2174_s10   ;;  %s1639_s9 = sphi %s1720_s9, %s2180_s9   ;;  %s1635_s8 = sphi %s1718_s8, %s2172_s8   ;;  %s1631_s30 = sphi %s1716_s30, %s2179_s30   ;;  %s1627_s29 = sphi %s1714_s29, %s2171_s29   ;;  %s1623_s28 = sphi %s1712_s28, %s2178_s28   ;;  %s1619_s27 = sphi %s1710_s27, %s2177_s27   ;;  %s1615_s26 = sphi %s1708_s26, %s2169_s26   ;;  %s1611_s25 = sphi %s1706_s25, %s2176_s25   ;;  %s1607_s24 = sphi %s1704_s24, %s2175_s24  }
  0x16   : > { %2135 = sst [smem:[#allocation17_spill]] %s1627_s29  ;;  %p56_p0 = scmp.eq.s32.totalorder %s1647_s11, 0 }
  0x17   : > { %2136 = sst [smem:[#allocation18_spill]] %s1631_s30  ;;  %p1761_p1 = scmp.ge.s32.totalorder %s38_s12, 2 }
  0x18   : > { %2137 = sst [smem:[#allocation19_spill]] %s1635_s8  ;;  %s74_s14 = sadd.s32 1, %s1615_s26 }
  0x19   : > { %2138 = sst [smem:[#allocation20_spill]] %s1643_s10  ;;  %p81_p2 = scmp.ne.s32.totalorder %s1615_s26, %s1611_s25 }
  0x1a   : > { %p87_p3 = scmp.ne.s32.totalorder %s1611_s25, %s1607_s24  ;;  %s2182_s12 = smov (%p1761_p1, %s38_s12), 0 }
  0x1b   : > { %2140 = sst [smem:[#allocation21_spill]] %s2182_s12  ;;  %p1776_p4 = por %p81_p2, %p56_p0 }
  0x1c   : > { %s71_s16 = ssub.s32 %s1639_s9, %s2182_s12  ;;  %p1234_p5 = scmp.lt.s32.totalorder %s1647_s11, 4 }
  0x1d   : > { %p72_p6 = scmp.eq.s32.totalorder %s71_s16, 0  ;;  %s286_s17 = sand.u32 1, %s1647_s11  }
  0x1e   : > { %s1785_s18 = sand.u32 1, %s1615_s26   ;;  %s2143_s1 = sld [smem:[#allocation27_spill]] }
  0x1f   : > { %s1788_s19 = scalar_select %p72_p6, %s1615_s26, %s74_s14  }
  0x20   : > { %s289_s7 = scalar_lea.vmem [#allocation5], %s1785_s18  ;;  %p1799_p7 = pnand %p1234_p5, %p1776_p4 }
  0x21   : > { %2142 = sst [smem:[#allocation22_spill]] %s1788_s19  ;;  %s296_s8 = sshll.u32 %s289_s7, 4  ;;  %s297_s8 = int_to_ptr.vmem [resolvable:$true] %s296_s8 }
  0x22   : > { %s1157_s12 = sshll.u32 %s1785_s18, 4  ;;  %p1163_p8 = scmp.ge.s32.totalorder %s1647_s11, 1 }
  0x23   : > { %s1805_s14 = scalar_lea.sflag [#allocation6], %s286_s17  ;;  %s352_s20 = scalar_lea.vmem [#allocation10], %s1157_s12 }
  0x24   : > { %s292_s22 = scalar_lea.hbm %s2143_s1, %s1639_s9  ;;  %s360_s21 = sshll.u32 %s352_s20, 4  ;;  %s1811_s21 = int_to_ptr.vmem [resolvable:$true] %s360_s21 }
  0x25   : > { %s294_s23 = sshll.u32 %s292_s22, 4  ;;  %p374_p9 = scmp.lt.s32.totalorder %s1647_s11, 5  ;;  %s295_s23 = int_to_ptr.hbm [resolvable:$true] %s294_s23 }
  0x26   : > { %1220 = dma.hbm_to_vmem [thread:$0]  (!%p1799_p7), %s295_s23, 16, %s297_s8, %s1805_s14  }
  0x27   : > { %p1813_p10 = pnand %p1163_p8, %p374_p9  ;;  %s1198_s15 = sshll.u32 %s1639_s9, 4 }
  0x28   : > { %s2146_s3 = sld [smem:[#allocation28_spill]]  ;;  %s324_s8 = scalar_lea.vmem [#allocation8], %s1157_s12 }
  0x29   : > { %s332_s23 = sshll.u32 %s324_s8, 4  ;;  %s2147_s5 = sld [smem:[#allocation30_spill]]  ;;  %s333_s23 = int_to_ptr.vmem [resolvable:$true] %s332_s23 }
  0x2a   : > { %s1824_s1 = scalar_lea.sflag [#allocation9], %s286_s17  ;;  %s2119_s22 = smov 64  }
  0x2b   : > { %s2120_s12 = smov 4   ;;  %s1835_s6 = sadd.s32 4294967295, %s1647_s11  }
  0x2c   : > { %s1152_s26 = sadd.s32 4294967294, %s1647_s11   ;;  %s41_s17 = sadd.s32 1, %s1643_s10 }
  0x2d   : > { %s2184_s17 = smov (!%p1761_p1, %s41_s17), %s1643_s10  ;;  %p55_p11 = scmp.ne.s32.totalorder %s1627_s29, %s1623_s28 }
  0x2e   : > { %s329_s19 = scalar_lea.hbm %s2146_s3, %s1198_s15  ;;  %p61_p12 = scmp.ne.s32.totalorder %s1623_s28, %s1619_s27 }
  0x2f   : > { %s330_s20 = sshll.u32 %s329_s19, 4  ;;  %s357_s4 = scalar_lea.hbm %s2147_s5, %s1198_s15  ;;  %s331_s20 = int_to_ptr.hbm [resolvable:$true] %s330_s20 }
  0x30   : > { %1226 = dma.hbm_to_vmem [thread:$0]  (!%p1799_p7), %s331_s20, 256, %s333_s23, %s1824_s1, %s2119_s22, %s2119_s22, %s2120_s12  }
  0x31   : > { %s358_s19 = sshll.u32 %s357_s4, 4  ;;  %s48_s15 = sadd.s32 1, %s1627_s29  ;;  %s1832_s19 = int_to_ptr.hbm [resolvable:$true] %s358_s19 }
  0x32   : > { %p43_p13 = scmp.ge.s32.totalorder %s2184_s17, 2  ;;  %p62_p2 = scmp.eq.s32.totalorder %s1835_s6, 0 }
  0x33   : > { %p1850_p4 = por %p56_p0, %p55_p11  ;;  %p241_p6 = scmp.eq.s32.totalorder %s1835_s6, 3 }
  0x34   : > { %s2186_s17 = smov (%p43_p13, %s2184_s17), 0  ;;  %p1860_p8 = por %p62_p2, %p61_p12 }
  0x35   : > { %2149 = sst [smem:[#allocation23_spill]] %s2186_s17  ;;  %p1867_p1 = por %p87_p3, %p62_p2 }
  0x36   : > { %s45_s23 = ssub.s32 %s1643_s10, %s2186_s17  ;;  %p1873_p0 = por %p241_p6, %p55_p11 }
  0x37   : > { %s2151_s8 = scalar_select %p1867_p1, 1, 0 }
  0x38   : > { %p46_p9 = scmp.eq.s32.totalorder %s45_s23, 0  ;;  %p247_p13 = scmp.eq.s32.totalorder %s1152_s26, 3 }
  0x39   : > { %2152 = sst [smem:[#allocation24_spill]] %s2151_s8  ;;  %s267_s22 = sand.u32 1, %s1627_s29  }
  0x3a   : > { %s1156_s12 = sshll.u32 %s1643_s10, 3  ;;  %p1885_p3 = por %p247_p13, %p61_p12 }
  0x3b   : > { %s1880_s3 = scalar_select %p46_p9, %s1627_s29, %s48_s15  }
  0x3c   : > { %s1155_s5 = sshll.u32 %s267_s22, 3  ;;  %s2156_s0 = sld [smem:[#allocation26_spill]] }
  0x3d   : > { %2154 = sst [smem:[#allocation25_spill]] %s1880_s3  ;;  %s271_s15 = scalar_lea.vmem [#allocation2], %s1155_s5 }
  0x3e   : > { %s279_s23 = sshll.u32 %s271_s15, 4  ;;  %p1215_p11 = pnand %p1234_p5, %p1850_p4  ;;  %s280_s23 = int_to_ptr.vmem [resolvable:$true] %s279_s23 }
  0x3f   : > { %s309_s29 = scalar_lea.hbm %s2110_s2, %s1639_s9  ;;  %s268_s17 = scalar_lea.sflag [#allocation3], %s267_s22 }
  0x40   : > { %s311_s30 = sshll.u32 %s309_s29, 4  ;;  %s2157_s5 = smov 4   ;;  %s312_s30 = int_to_ptr.hbm [resolvable:$true] %s311_s30 }
  0x41   : > { %s1915_s3 = sand.u32 (!%p1813_p10), 1, %s1623_s28  }
  0x42   : > { %s275_s8 = scalar_lea.hbm %s2156_s0, %s1156_s12  ;;  %s306_s12 = scalar_lea.vmem [#allocation7], %s1785_s18 }
  0x43   : > { %s277_s26 = sshll.u32 %s275_s8, 4  ;;  %s313_s0 = sshll.u32 %s306_s12, 4  ;;  %s278_s26 = int_to_ptr.hbm [resolvable:$true] %s277_s26  ;;  %s314_s0 = int_to_ptr.vmem [resolvable:$true] %s313_s0 }
  0x44   : > { %1217 = dma.hbm_to_vmem [thread:$0]  (!%p1215_p11), %s278_s26, 128, %s280_s23, %s268_s17  }
  0x45   : > { %1223 = dma.hbm_to_vmem [thread:$0]  (!%p1799_p7), %s312_s30, 16, %s314_s0, %s1805_s14  }
  0x46   : > { %s2158_s8 = smov 64   ;;  %378 = sbr.rel (%p1813_p10) target bundleno = 1879 (0x757), region = 48 }
  0x47   : > { %1229 = dma.hbm_to_vmem [thread:$0]  (!%p1799_p7), %s1832_s19, 256, %s1811_s21, %s1824_s1, %s2158_s8, %s2158_s8, %s2157_s5  }
  0x48   : > { %s1164_s29 = sshll.u32 (!%p1813_p10), %s1915_s3, 3  ;;  %s381_s10 = scalar_lea.sflag (!%p1813_p10), [#allocation3], %s1915_s3 }
  0x49   : > { %s384_s18 = scalar_lea.vmem (!%p1813_p10), [#allocation2], %s1164_s29 }
  0x4b   : > { %1590 = dma.done.wait (%p1860_p8), %s381_s10, 128  }
  0x4c   : > { %1592 = vsyncadd (%p1860_p8), %s381_s10, 4294967168  ;;  %s390_s16 = sand.u32 1, %s1835_s6   ;;  %s1925_s14 = sand.u32 1, %s1611_s25  }
  0x4d   : > { %s391_s21 = scalar_lea.sflag [#allocation6], %s390_s16  ;;  %s393_s7 = scalar_lea.vmem [#allocation5], %s1925_s14 }
  0x4e   : > { %1594 = dma.done.wait (%p1867_p1), %s391_s21, 32  }
  0x4f   : > { %1596 = vsyncadd (%p1867_p1), %s391_s21, 4294967264  ;;  %s1165_s1 = sshll.u32 %s1925_s14, 4  ;;  %s402_s22 = scalar_lea.vmem [#allocation7], %s1925_s14 }
  0x50   : > { %s409_s19 = scalar_lea.sflag [#allocation9], %s390_s16  ;;  %s1934_s4 = scalar_lea.vmem [#allocation8], %s1165_s1 }
  0x51   : > { %1598 = dma.done.wait (%p1867_p1), %s409_s19, 512  }
  0x52   : > { %1600 = vsyncadd (%p1867_p1), %s409_s19, 4294966784  ;;  %s2160_s6 = sld [smem:[#allocation18_spill]]  ;;  %s1952_s10 = scalar_lea.vmem [#allocation10], %s1165_s1 }
  0x53   : > { %s2161_s23 = sld [smem:[#allocation29_spill]]  ;;  %s1954_s16 = scalar_lea.vmem [#allocation11], %s1164_s29 }
  0x54   : > { %s2162_s5 = sld [smem:[#allocation31_spill]] }
  0x58   : > { %p478_p5 = scmp.lt.s32.totalorder %s2160_s6, 1  ;;  %p1168_p7 = scmp.ne.s32.totalorder %s2160_s6, 0 }
  0x5a   : > { %s1942_s13 = scalar_select %p478_p5, %s2160_s6, 1 }
  0x5b   : > { %488 = sbr.rel (%p1168_p7) target bundleno = 98 (0x62), region = 72 }
  0x5c   : > { %s480_s30 = scalar_lea.vmem %s2161_s23, %s1942_s13  ;;  %s483_s8 = scalar_lea.vmem %s2162_s5, %s1942_s13 }
  0x60   : > { %v489_v0 = vld [vmem:[%s384_s18] sm:$0xff]  ;;  %vm490_vm0 = vcmask 261120  }
  0x61   : > { %491 = vst.msk [vmem:[%s1954_s16] sm:$0xff] %vm490_vm0, %v489_v0 }
  0x62 PF: > { %vm493_vm1 = vcmask 261120   ;;  %v1651_v3 = vmov 32.0   ;;  %v1201_v15 = vld [vmem:[%s1934_s4 + $0x8] sm:$0xff]  ;;  %v1200_v16 = vld [vmem:[%s1934_s4] sm:$0xff]  ;;  %s1652_s21 = smov 88   ;;  %s1653_s14 = smov 96   ;;  %v570_v46 = vlaneseq }
  0x63   : > { %1343 = vrcp.f32 %v1651_v3  ;;  %563 = vmatpush.bf16.msra.mxu0 %v1201_v15  ;;  %v1339_v26 = vld [vmem:[%s393_s7] ss:$0 sm:$0xff]  ;;  %s1654_s7 = smov 80   ;;  %s1655_s1 = smov 112   ;;  %vm581_vm6 = vcmask 64512   ;;  %vm620_vm8 = vcmask 1043456  }
  0x64   : > { %v1340_v29 = vld [vmem:[%s402_s22] ss:$0 sm:$0xff]  ;;  %v1987_v47 = vshrl.u32 %v570_v46, 7  ;;  %v1989_v48 = vand.u32 127, %v570_v46  ;;  %s1656_s22 = smov 64   ;;  %s1657_s19 = smov 120  }
  0x65   : > { %v1341_v33 = vld [vmem:[%s480_s30] ss:$0 sm:$0xff]  ;;  %s1658_s4 = smov 72   ;;  %s1659_s6 = smov 104   ;;  %v638_v59 = vld [vmem:[%s1952_s10] sm:$0xf] }
  0x66   : > { %vm574_vm7 = vcmp.le.s32.totalorder %v1989_v48, %v1987_v47  ;;  %v723_v60 = vsel %vm620_vm8, %v638_v59, 0  ;;  %s1660_s26 = smov 40   ;;  %s1661_s15 = smov 56  }
  0x67   : > { %564 = vmatpush.bf16.msra.mxu0 %v1200_v16  ;;  %s1662_s23 = smov 48   ;;  %s2165_s13 = sld [smem:[#allocation19_spill]] }
  0x68   : > { %v1959_v1 = vld [vmem:[%s1954_s16] sm:$0xff]  ;;  %s2166_s29 = sld [smem:[#allocation32_spill]] }
  0x69   : > { %v494_v2 = vsel %vm493_vm1, %v1959_v1, 0.0  ;;  %v1344_v4 = vpop.eup %1343 }
  0x6a   : > { %495 = vadd.xlane.f32.xlu0 %v494_v2  ;;  %v498_v5 = vmul.f32 32.0, %v1344_v4  ;;  %vm502_vm2 = vweird.f32 %v1344_v4 }
  0x6c   : > { %v499_v6 = vsub.f32 1.0, %v498_v5 }
  0x6d   : > { %s1195_s5 = sshll.u32 %s2165_s13, 3 }
  0x6e   : > { %v500_v7 = vmul.f32 %v1344_v4, %v499_v6  ;;  %s2167_s18 = smov %s2166_s29  ;;  %s969_s0 = scalar_lea.hbm %s2166_s29, %s1195_s5 }
  0x70   : > { %v501_v8 = vadd.f32 %v1344_v4, %v500_v7 }
  0x72   : > { %v503_v9 = vsel %vm502_vm2, %v1344_v4, %v501_v8 }
  0xdd   : > { %v496_v10 = vpop.xlane.xlu0 %495 }
  0xde   : > { %v504_v11 = vmul.f32 %v503_v9, %v496_v10 }
  0xe0   : > { %v505_v12 = vsub.f32 %v1959_v1, %v504_v11 }
  0xe2   : > { %v506_v13 = vmul.f32 %v505_v12, %v505_v12 }
  0xe4   : > { %v507_v14 = vsel %vm493_vm1, %v506_v13, 0.0 }
  0xe5   : > { %508 = vadd.xlane.f32.xlu0 %v507_v14 }
 0x158   : > { %v509_v17 = vpop.xlane.xlu0 %508 }
 0x159   : > { %v510_v18 = vmul.f32 %v509_v17, %v503_v9 }
 0x15b   : > { %v511_v19 = vadd.f32 1e-05, %v510_v18 }
 0x15d   : > { %1345 = vrsqrt.f32 %v511_v19  ;;  %vm518_vm4 = vweird.f32 %v511_v19 }
 0x163   : > { %v1346_v20 = vpop.eup %1345 }
 0x164   : > { %v513_v21 = vmul.f32 %v1346_v20, %v511_v19  ;;  %vm519_vm3 = vweird.f32 %v1346_v20 }
 0x165   : > { %vm520_vm5 = vmor %vm518_vm4, %vm519_vm3 }
 0x166   : > { %v514_v22 = vmul.f32 %v1346_v20, %v513_v21 }
 0x168   : > { %v515_v23 = vmul.f32 0.5, %v514_v22 }
 0x16a   : > { %v516_v24 = vsub.f32 1.5, %v515_v23 }
 0x16c   : > { %v517_v25 = vmul.f32 %v1346_v20, %v516_v24 }
 0x16e   : > { %v521_v27 = vsel %vm520_vm5, %v1346_v20, %v517_v25 }
 0x16f   : > { %v522_v28 = vmul.f32 %v521_v27, %v505_v12 }
 0x171   : > { %v527_v30 = vmul.f32 %v1339_v26, %v522_v28 }
 0x173   : > { %v532_v31 = vadd.f32 %v1340_v29, %v527_v30 }
 0x175   : > { %v533_v32 = vpack.c.bf16 %v532_v31, %v532_v31 }
 0x177   : > { %1177 = vmatmul.msk.bf16.vlgmr.msra.gmra.mxu0 %vm493_vm1, %v533_v32 }
 0x1f4   : > { %v566_v34 = vpop.f32.mrf.mxu0 }
 0x1f5   : > { %v567_v35 = vadd.f32 %v1341_v33, %v566_v34 }
 0x1f7   : > { %v575_v36 = vpack.c.bf16 %v567_v35, %v567_v35 }
 0x1f9   : > { %v577_v37 = vunpack.c.l.b16 %v575_v36 }
 0x1fb   : > { %v1977_v38 = vpack.c.b16 %v577_v37, %v577_v37 }
 0x1fc   : > { %v568_v39 = vpop.f32.mrf.mxu0 }
 0x1fd   : > { %641 = vrot.lane.b32.xlu0 %v1977_v38, %s1652_s21  ;;  %579 = vrot.lane.b32.xlu1 %v1977_v38, %s1653_s14  ;;  %s971_s21 = sshll.u32 %s1954_s16, 4  ;;  %s973_s14 = sshll.u32 %s969_s0, 4  ;;  %s972_s21 = int_to_ptr.vmem [resolvable:$true] %s971_s21  ;;  %s974_s14 = int_to_ptr.hbm [resolvable:$true] %s973_s14 }
 0x205   : > { %740 = vrot.lane.b32.xlu0 %v1977_v38, %s1654_s7  ;;  %s959_s7 = scalar_lea.sflag [#allocation4], %s1915_s3 }
 0x20d   : > { %738 = vrot.lane.b32.xlu0 %v1977_v38, %s1655_s1  ;;  %s1531_s1 = sshra.s32 %s974_s14, 4  ;;  %s1532_s1 = int_to_ptr.hbm [resolvable:$true] %s1531_s1 }
 0x20e   : > { %p1538_p4 = scmp.lt.s32.totalorder %s1532_s1, %s2167_s18 }
 0x26f   : > { %v642_v40 = vpop.permute.xlu0 %641  ;;  %v580_v41 = vpop.permute.xlu1 %579 }
 0x270   : > { %v586_v42 = vsel %vm581_vm6, %v580_v41, 0  ;;  %v647_v43 = vsel %vm581_vm6, %v642_v40, 0 }
 0x271   : > { %595 = vmatpush.bf16.xpose.msra.mxu1 %v586_v42  ;;  %656 = vmatpush.bf16.xpose.msra.mxu3 %v647_v43 }
 0x277   : > { %v741_v44 = vpop.permute.xlu0 %740 }
 0x278   : > { %1178 = vmatmul.msk.bf16.vlgmr.msra.gmra.mxu1 %vm581_vm6, %v575_v36  ;;  %v746_v45 = vsel %vm581_vm6, %v741_v44, 0 }
 0x279   : > { %755 = vmatpush.bf16.xpose.msrb.mxu3 %v746_v45  ;;  %732 = vmatpush.bf16.msrb.mxu1 %v723_v60 }
 0x27f   : > { %v739_v7 = vpop.permute.xlu0 %738 }
 0x2f5   : > { %v597_v49 = vpop.f32.mrf.mxu1 }
 0x2f6   : > { %v601_v50 = vmul.f32 0.17677669, %v597_v49 }
 0x2f8   : > { %v602_v51 = vsel %vm574_vm7, %v601_v50, -1e+30 }
 0x2f9   : > { %v603_v52 = vsel %vm581_vm6, %v602_v51, -inf }
 0x2fa   : > { %604 = vmax.xlane.f32.xlu1 %v603_v52 }
 0x2fd   : > { %v599_v53 = vpop.f32.mrf.mxu1 }
 0x36d   : > { %v605_v54 = vpop.xlane.xlu1 %604 }
 0x36e   : > { %v606_v55 = vsub.f32 %v602_v51, %v605_v54 }
 0x370   : > { %v607_v56 = vmul.f32 1.442695, %v606_v55 }
 0x372   : > { %1347 = vpow2.f32 %v607_v56 }
 0x378   : > { %v1348_v57 = vpop.eup %1347 }
 0x379   : > { %v609_v58 = vsel %vm581_vm6, %v1348_v57, 0.0 }
 0x37a   : > { %610 = vadd.xlane.f32.xlu2 %v609_v58  ;;  %v1182_v58 = vld [vmem:[%s1952_s10 + $0x4] sm:$0xf] }
 0x37b   : > { %v704_v59 = vsel %vm620_vm8, %v1182_v58, 0 }
 0x37c   : > { %713 = vmatpush.bf16.msrb.mxu0 %v704_v59 }
 0x392   : > { %615 = vrot.lane.b32.xlu2 %v1977_v38, %s1656_s22  ;;  %s1533_s22 = scalar_lea.hbm %s1532_s1, 8 }
 0x393   : > { %p1534_p10 = scmp.ne.s32.totalorder %s1532_s1, %s1533_s22 }
 0x395   : > { %p1535_p12 = pnand %p1534_p10, %p1873_p0 }
 0x397   : > { %p1536_p2 = pneg %p1535_p12 }
 0x39a   : > { %639 = vrot.lane.b32.xlu2 %v1977_v38, %s1657_s19 }
 0x3a2   : > { %821 = vrot.lane.b32.xlu2 %v1977_v38, %s1658_s4 }
 0x3aa   : > { %819 = vrot.lane.b32.xlu2 %v1977_v38, %s1659_s6  ;;  %s1537_s6 = scalar_lea.hbm %s2167_s18, 16 }
 0x3ab   : > { %p1539_p6 = scmp.lt.s32.totalorder %s1537_s6, %s1533_s22 }
 0x3ad   : > { %p1540_p8 = por %p1539_p6, %p1538_p4 }
 0x3af   : > { %p1541_p1 = pnand %p1540_p8, %p1536_p2 }
 0x3ed   : > { %v611_v61 = vpop.xlane.xlu2 %610 }
 0x3ee   : > { %1349 = vrcp.f32 %v611_v61  ;;  %v1187_v61 = vld [vmem:[%s1952_s10 + $0x8] sm:$0xf] }
 0x3f4   : > { %v1350_v62 = vpop.eup %1349 }
 0x3f5   : > { %v616_v63 = vpop.permute.xlu2 %615  ;;  %v613_v0 = vmul.f32 %v1350_v62, %v1348_v57  ;;  %v803_v62 = vsel %vm620_vm8, %v1187_v61, 0 }
 0x3f6   : > { %v622_v2 = vsel %vm620_vm8, %v616_v63, 0  ;;  %812 = vmatpush.bf16.msra.mxu0 %v803_v62 }
 0x3f7   : > { %631 = vmatpush.bf16.msra.mxu2 %v622_v2  ;;  %v614_v3 = vpack.c.bf16 %v613_v0, %v613_v0 }
 0x3fa   : > { %1179 = vmatmul.msk.bf16.vlgmr.msra.gmra.mxu2 %vm581_vm6, %v614_v3  ;;  %v1191_v3 = vld [vmem:[%s1952_s10 + $0xc] sm:$0xf] }
 0x3fd   : > { %v640_v4 = vpop.permute.xlu2 %639 }
 0x3fe   : > { %1180 = vmatmul.msk.bf16.vlgmr.msra.gmra.mxu3 %vm581_vm6, %v640_v4  ;;  %v884_v4 = vsel %vm620_vm8, %v1191_v3, 0 }
 0x405   : > { %v822_v5 = vpop.permute.xlu2 %821 }
 0x406   : > { %v827_v6 = vsel %vm581_vm6, %v822_v5, 0 }
 0x407   : > { %836 = vmatpush.bf16.xpose.msra.mxu1 %v827_v6 }
 0x40d   : > { %v820_v16 = vpop.permute.xlu2 %819 }
 0x40e   : > { %1185 = vmatmul.msk.bf16.vlgmr.msrb.gmra.mxu3 %vm581_vm6, %v739_v7 }
 0x47d   : > { %v633_v8 = vpop.f32.mrf.mxu2 }
 0x47e   : > { %v637_v9 = vpack.c.bf16 %v633_v8, %v633_v8 }
 0x480   : > { %1184 = vmatmul.msk.bf16.vlgmr.msrb.gmra.mxu1 %vm581_vm6, %v637_v9 }
 0x481   : > { %v658_v10 = vpop.f32.mrf.mxu3 }
 0x482   : > { %v662_v11 = vmul.f32 0.17677669, %v658_v10 }
 0x484   : > { %v663_v12 = vsel %vm574_vm7, %v662_v11, -1e+30 }
 0x485   : > { %v635_v13 = vpop.f32.mrf.mxu2  ;;  %v664_v14 = vsel %vm581_vm6, %v663_v12, -inf }
 0x486   : > { %665 = vmax.xlane.f32.xlu1 %v664_v14 }
 0x489   : > { %v660_v15 = vpop.f32.mrf.mxu3 }
 0x490   : > { %1189 = vmatmul.msk.bf16.vlgmr.msra.gmra.mxu1 %vm581_vm6, %v820_v16 }
 0x491   : > { %v757_v17 = vpop.f32.mrf.mxu3 }
 0x492   : > { %v761_v18 = vmul.f32 0.17677669, %v757_v17 }
 0x494   : > { %v762_v19 = vsel %vm574_vm7, %v761_v18, -1e+30 }
 0x495   : > { %v763_v20 = vsel %vm581_vm6, %v762_v19, -inf }
 0x496   : > { %764 = vmax.xlane.f32.xlu2 %v763_v20  ;;  %v1663_v20 = vmov 1.4142135  }
 0x499   : > { %v759_v21 = vpop.f32.mrf.mxu3 }
 0x4ae   : > { %856 = vrot.lane.b32.xlu2 %v1977_v38, %s1660_s26 }
 0x4f9   : > { %v666_v22 = vpop.xlane.xlu1 %665 }
 0x4fa   : > { %v667_v23 = vsub.f32 %v663_v12, %v666_v22 }
 0x4fc   : > { %v668_v24 = vmul.f32 1.442695, %v667_v23 }
 0x4fd   : > { %v2020_v25 = vpop.f32.mrf.mxu1 }
 0x4fe   : > { %1351 = vpow2.f32 %v668_v24 }
 0x504   : > { %v1352_v26 = vpop.eup %1351 }
 0x505   : > { %v736_v27 = vpop.f32.mrf.mxu1  ;;  %v670_v28 = vsel %vm581_vm6, %v1352_v26, 0.0 }
 0x506   : > { %671 = vadd.xlane.f32.xlu1 %v670_v28 }
 0x509   : > { %v765_v29 = vpop.xlane.xlu2 %764 }
 0x50a   : > { %v766_v30 = vsub.f32 %v762_v19, %v765_v29 }
 0x50c   : > { %v767_v31 = vmul.f32 1.442695, %v766_v30 }
 0x50d   : > { %v838_v32 = vpop.f32.mrf.mxu1 }
 0x50e   : > { %v842_v33 = vmul.f32 0.17677669, %v838_v32  ;;  %1353 = vpow2.f32 %v767_v31 }
 0x510   : > { %v843_v34 = vsel %vm574_vm7, %v842_v33, -1e+30 }
 0x511   : > { %v857_v35 = vpop.permute.xlu2 %856  ;;  %v844_v36 = vsel %vm581_vm6, %v843_v34, -inf }
 0x512   : > { %v862_v37 = vsel %vm620_vm8, %v857_v35, 0  ;;  %845 = vmax.xlane.f32.xlu0 %v844_v36 }
 0x513   : > { %871 = vmatpush.bf16.msra.mxu3 %v862_v37 }
 0x514   : > { %v1354_v40 = vpop.eup %1353 }
 0x515   : > { %v840_v39 = vpop.f32.mrf.mxu1  ;;  %v769_v41 = vsel %vm581_vm6, %v1354_v40, 0.0 }
 0x51a   : > { %770 = vadd.xlane.f32.xlu0 %v769_v41 }
 0x51f   : > { %676 = vrot.lane.b32.xlu1 %v1977_v38, %s1661_s15 }
 0x52e   : > { %775 = vrot.lane.b32.xlu0 %v1977_v38, %s1662_s23 }
 0x579   : > { %v672_v42 = vpop.xlane.xlu1 %671 }
 0x57a   : > { %1355 = vrcp.f32 %v672_v42 }
 0x580   : > { %v1356_v46 = vpop.eup %1355 }
 0x581   : > { %v674_v48 = vmul.f32 %v1356_v46, %v1352_v26  ;;  %v1342_v26 = vld [vmem:[%s483_s8] ss:$0 sm:$0xff] }
 0x583   : > { %v675_v38 = vpack.c.bf16 %v674_v48, %v674_v48 }
 0x585   : > { %v846_v43 = vpop.xlane.xlu0 %845 }
 0x586   : > { %v847_v44 = vsub.f32 %v843_v34, %v846_v43 }
 0x588   : > { %v848_v45 = vmul.f32 1.442695, %v847_v44 }
 0x58a   : > { %1357 = vpow2.f32 %v848_v45 }
 0x58d   : > { %v771_v52 = vpop.xlane.xlu0 %770 }
 0x58e   : > { %1359 = vrcp.f32 %v771_v52 }
 0x590   : > { %v1358_v47 = vpop.eup %1357 }
 0x591   : > { %v677_v49 = vpop.permute.xlu1 %676  ;;  %v850_v50 = vsel %vm581_vm6, %v1358_v47, 0.0 }
 0x592   : > { %851 = vadd.xlane.f32.xlu1 %v850_v50  ;;  %v682_v51 = vsel %vm620_vm8, %v677_v49, 0 }
 0x593   : > { %691 = vmatpush.bf16.msrb.mxu2 %v682_v51 }
 0x594   : > { %v1360_v53 = vpop.eup %1359 }
 0x595   : > { %v773_v54 = vmul.f32 %v1360_v53, %v1354_v40 }
 0x596   : > { %1181 = vmatmul.msk.bf16.vlgmr.msrb.gmra.mxu2 %vm581_vm6, %v675_v38 }
 0x597   : > { %v774_v57 = vpack.c.bf16 %v773_v54, %v773_v54 }
 0x5a0   : > { %v776_v55 = vpop.permute.xlu0 %775 }
 0x5a1   : > { %v781_v56 = vsel %vm620_vm8, %v776_v55, 0 }
 0x5a2   : > { %790 = vmatpush.bf16.msra.mxu2 %v781_v56 }
 0x5a6   : > { %1186 = vmatmul.msk.bf16.vlgmr.msra.gmra.mxu2 %vm581_vm6, %v774_v57 }
 0x5a7   : > { %893 = vmatpush.bf16.msrb.mxu2 %v884_v4 }
 0x605   : > { %v852_v60 = vpop.xlane.xlu1 %851 }
 0x606   : > { %1361 = vrcp.f32 %v852_v60 }
 0x607   : > { %1363 = vrcp.f32 %v1663_v20 }
 0x60c   : > { %v1362_v63 = vpop.eup %1361 }
 0x60d   : > { %v854_v0 = vmul.f32 %v1362_v63, %v1358_v47  ;;  %v1364_v21 = vpop.eup %1363 }
 0x60e   : > { %v908_v22 = vmul.f32 1.4142135, %v1364_v21  ;;  %vm912_vm9 = vweird.f32 %v1364_v21 }
 0x60f   : > { %v855_v2 = vpack.c.bf16 %v854_v0, %v854_v0 }
 0x610   : > { %v909_v23 = vsub.f32 1.0, %v908_v22 }
 0x611   : > { %1190 = vmatmul.msk.bf16.vlgmr.msra.gmra.mxu3 %vm581_vm6, %v855_v2 }
 0x612   : > { %v910_v24 = vmul.f32 %v1364_v21, %v909_v23 }
 0x614   : > { %v911_v28 = vadd.f32 %v1364_v21, %v910_v24 }
 0x619   : > { %v693_v5 = vpop.f32.mrf.mxu2 }
 0x61a   : > { %v697_v6 = vpack.c.bf16 %v693_v5, %v693_v5 }
 0x61c   : > { %1183 = vmatmul.msk.bf16.vlgmr.msrb.gmra.mxu0 %vm581_vm6, %v697_v6 }
 0x621   : > { %v695_v7 = vpop.f32.mrf.mxu2 }
 0x629   : > { %v792_v8 = vpop.f32.mrf.mxu2 }
 0x62a   : > { %v796_v9 = vpack.c.bf16 %v792_v8, %v792_v8 }
 0x62c   : > { %1188 = vmatmul.msk.bf16.vlgmr.msra.gmra.mxu0 %vm581_vm6, %v796_v9 }
 0x631   : > { %v794_v10 = vpop.f32.mrf.mxu2 }
 0x694   : > { %v873_v11 = vpop.f32.mrf.mxu3 }
 0x695   : > { %v877_v12 = vpack.c.bf16 %v873_v11, %v873_v11 }
 0x697   : > { %1192 = vmatmul.msk.bf16.vlgmr.msrb.gmra.mxu2 %vm581_vm6, %v877_v12 }
 0x699   : > { %v715_v13 = vpop.f32.mrf.mxu0 }
 0x69a   : > { %v735_v16 = vadd.f32 %v2020_v25, %v715_v13  ;;  %v913_v25 = vsel %vm912_vm9, %v1364_v21, %v911_v28 }
 0x69c   : > { %v875_v14 = vpop.f32.mrf.mxu3 }
 0x6a1   : > { %v717_v15 = vpop.f32.mrf.mxu0 }
 0x6a9   : > { %v814_v17 = vpop.f32.mrf.mxu0 }
 0x6aa   : > { %v818_v18 = vadd.f32 %v814_v17, %v735_v16 }
 0x6b1   : > { %v816_v19 = vpop.f32.mrf.mxu0 }
 0x71a   : > { %v895_v27 = vpop.f32.mrf.mxu2 }
 0x71b   : > { %v899_v29 = vadd.f32 %v895_v27, %v818_v18 }
 0x71d   : > { %v904_v30 = vadd.f32 %v1342_v26, %v899_v29 }
 0x71f   : > { %v905_v31 = vadd.f32 %v904_v30, %v1959_v1 }
 0x721   : > { %v914_v32 = vmul.f32 %v913_v25, %v905_v31  ;;  %v906_v5 = vmul.f32 0.5, %v905_v31 }
 0x722   : > { %v897_v33 = vpop.f32.mrf.mxu2 }
 0x723   : > { %v915_v34 = vmul.f32 %v914_v32, %v914_v32 }
 0x725   : > { %v916_v35 = vmin.f32 %v915_v34, 16.0 }
 0x727   : > { %v917_v36 = vmul.f32 2.1237322e-06, %v916_v35  ;;  %v928_v37 = vmul.f32 3.8918573e-05, %v916_v35 }
 0x729   : > { %v918_v39 = vadd.f32 0.00028619796, %v917_v36  ;;  %v929_v40 = vadd.f32 0.001143296, %v928_v37 }
 0x72b   : > { %v919_v41 = vmul.f32 %v918_v39, %v916_v35  ;;  %v930_v42 = vmul.f32 %v929_v40, %v916_v35 }
 0x72d   : > { %v931_v43 = vadd.f32 0.014752088, %v930_v42  ;;  %v920_v44 = vadd.f32 0.0036580483, %v919_v41 }
 0x72f   : > { %v932_v45 = vmul.f32 %v931_v43, %v916_v35  ;;  %v921_v47 = vmul.f32 %v920_v44, %v916_v35 }
 0x731   : > { %v933_v46 = vadd.f32 0.112945676, %v932_v45  ;;  %v922_v50 = vadd.f32 0.05243302, %v921_v47 }
 0x733   : > { %v934_v48 = vmul.f32 %v933_v46, %v916_v35  ;;  %v923_v52 = vmul.f32 %v922_v50, %v916_v35 }
 0x735   : > { %v935_v49 = vadd.f32 0.4994258, %v934_v48  ;;  %v924_v38 = vadd.f32 0.18741608, %v923_v52 }
 0x737   : > { %v936_v51 = vmul.f32 %v935_v49, %v916_v35  ;;  %v925_v54 = vmul.f32 %v924_v38, %v916_v35 }
 0x739   : > { %v937_v1 = vadd.f32 1.0, %v936_v51  ;;  %v926_v58 = vadd.f32 1.1283791, %v925_v54 }
 0x73b   : > { %1365 = vrcp.f32 %v937_v1  ;;  %v949_v57 = vand.u32 2147483648, %v937_v1  ;;  %v947_v60 = vand.u32 2147483647, %v937_v1  ;;  %vm943_vm11 = vweird.f32 %v937_v1 }
 0x73c   : > { %v927_v63 = vmul.f32 %v926_v58, %v914_v32 }
 0x73d   : > { %v950_v62 = vor.u32 1.1754944e-38, %v949_v57  ;;  %vm948_vm13 = vcmp.eq.f32.partialorder %v947_v60, 8.507059e+37 }
 0x741   : > { %v1366_v53 = vpop.eup %1365 }
 0x742   : > { %v939_v55 = vmul.f32 %v1366_v53, %v937_v1  ;;  %vm944_vm10 = vweird.f32 %v1366_v53 }
 0x743   : > { %vm945_vm12 = vmor %vm943_vm11, %vm944_vm10 }
 0x744   : > { %v940_v56 = vsub.f32 1.0, %v939_v55 }
 0x746   : > { %v941_v59 = vmul.f32 %v1366_v53, %v940_v56 }
 0x748   : > { %v942_v61 = vadd.f32 %v1366_v53, %v941_v59 }
 0x74a   : > { %v946_v0 = vsel %vm945_vm12, %v1366_v53, %v942_v61 }
 0x74b   : > { %v951_v2 = vsel %vm948_vm13, %v950_v62, %v946_v0 }
 0x74c   : > { %v952_v3 = vmul.f32 %v951_v2, %v927_v63 }
 0x74e   : > { %v1193_v4 = vclamps-f32 %v952_v3, 1.0 }
 0x750   : > { %v955_v6 = vadd.f32 1.0, %v1193_v4 }
 0x752   : > { %v956_v7 = vmul.f32 %v955_v6, %v906_v5 }
 0x754   : > { %957 = vst.msk [vmem:[%s1954_s16] sm:$0xff] %vm493_vm1, %v956_v7 }
 0x755   : > { %1544 = shalt.err (!%p1541_p1)
}
 0x756   : > { %1212 = dma.vmem_to_hbm [thread:$0]  (%p1873_p0), %s972_s21, 128, %s974_s14, %s959_s7  }
 0x757 PF: > { %p1235_p9 = scmp.ge.s32.totalorder %s1647_s11, 2  ;;  %s985_s3 = sand.u32 1, %s1619_s27  }
 0x758   : > { %s986_s16 = scalar_lea.sflag [#allocation4], %s985_s3 }
 0x759   : > { %p1231_p13 = pnand %p1235_p9, %p1885_p3 }
 0x75b   : > { %p1232_p11 = pneg %p1231_p13 }
 0x75d   : > { %1602 = dma.done.wait (%p1232_p11), %s986_s16, 128  }
 0x75e   : > { %1604 = vsyncadd (%p1232_p11), %s986_s16, 4294967168  ;;  %s29_s11 = sadd.s32 1, %s1647_s11   ;;  %s2168_s23 = sld [smem:[#allocation16_spill]] }
 0x75f   : > { %p26_p5 = scmp.ge.s32.totalorder %s29_s11, 6   ;;  %s2169_s26 = sld [smem:[#allocation22_spill]] }
 0x760   : > { %s2170_s20 = sld [smem:[#allocation17_spill]]  ;;  %s2175_s24 = smov %s1611_s25 }
 0x761   : > { %s2171_s29 = sld [smem:[#allocation25_spill]]  ;;  %s2177_s27 = smov %s1623_s28 }
 0x762   : > { %s2172_s8 = sld [smem:[#allocation20_spill]]  ;;  %s2179_s30 = smov %s1639_s9 }
 0x763   : > { %s2173_s17 = sld [smem:[#allocation21_spill]] }
 0x764   : > { %s2174_s10 = sld [smem:[#allocation23_spill]]  ;;  %s2176_s25 = smov %s2168_s23 }
 0x765   :  { %28 = sbr.rel (!%p26_p5) target bundleno = 21 (0x15), region = 154 }
 0x766   : > { %s2178_s28 = smov %s2170_s20 }
 0x769   : > { %s2180_s9 = smov %s2173_s17 }
 0x76a   :  { %992 = vsyncpa [#allocation3], 1 }
 0x76b   :  { %994 = vsyncpa [#allocation3 + $0x1], 1 }
 0x76c   :  { %995 = vsyncpa [#allocation6], 1 }
 0x76d   :  { %997 = vsyncpa [#allocation6 + $0x1], 1 }
 0x76e   :  { %998 = vsyncpa [#allocation9], 1 }
 0x76f   :  { %1000 = vsyncpa [#allocation9 + $0x1], 1 }
 0x770   :  { %1001 = vsyncpa [#allocation4], 1 }
 0x771   :  { %1003 = vsyncpa [#allocation4 + $0x1], 1 }

</bundles_post_ra>
